<compile_context>
chip_gen: v7x
topology: tpu7x:2x2x1
jax: 0.10.0
libtpu: 0.0.40
codegen_flags: <defaults>
</compile_context>

<pallas_src>
import functools

import jax
import jax.numpy as jnp
from jax.experimental import pallas as pl
from jax.experimental.pallas import tpu as pltpu

BASE_FEAT = 919   # MetaFeat output width (fixed by the module)
LANE = 128        # TPU lane width; all matmul N / output lane dims padded to this


def _round_up(x, m):
    return ((x + m - 1) // m) * m


def _k_tiling(K):
    """Return (TK, K_pad): one resident K step for small K, 512-wide K tiles else."""
    if K <= 2048:
        return K, K
    TK = 512
    return TK, _round_up(K, TK)


# -----------------------------------------------------------------------------
# Kernel
# -----------------------------------------------------------------------------
def metachrom_kernel(x_ref, wf_ref, bf_ref, w1_ref, b1_ref, w2_ref, b2_ref,
                     out_ref, front_acc):
    k = pl.program_id(1)

    @pl.when(k == 0)
    def _():
        front_acc[...] = jnp.zeros_like(front_acc)

    # In-kernel bf16 cast of the streamed f32 x tile (no wrapper-side cast pass).
    x = x_ref[...].astype(jnp.bfloat16)                           # [TB, TK]

    # Fused front end: [base_model(x) | seq_model(x)] as one wide-N matmul,
    # accumulated in f32 over the K grid axis (single step for small K).
    # Identical to torch.cat((feat, out), 1) for the stand-in projections.
    front_acc[...] += jnp.dot(x, wf_ref[...],
                              preferred_element_type=jnp.float32)

    @pl.when(k == pl.num_programs(1) - 1)
    def _():
        front = front_acc[...] + bf_ref[...]                      # [TB, Nf_pad] f32

        # classifier: Linear(919+T, T) -> ReLU
        h = (jnp.dot(front.astype(jnp.bfloat16), w1_ref[...],
                     preferred_element_type=jnp.float32) + b1_ref[...])
        h = jnp.maximum(h, 0.0)

        # classifier: Linear(T, T) -> Sigmoid
        logits = (jnp.dot(h.astype(jnp.bfloat16), w2_ref[...],
                          preferred_element_type=jnp.float32) + b2_ref[...])
        # sigmoid(x) = 0.5*(1 + tanh(x/2)): tanh on the EUP slot, no divide,
        # no inf intermediate for very negative logits.
        out_ref[...] = 0.5 * (jnp.tanh(0.5 * logits) + 1.0)


# -----------------------------------------------------------------------------
# Parameter prep (done ONCE, outside jit): zero-pad to lane-aligned shapes.
# -----------------------------------------------------------------------------
def pad_params(params, num_target):
    wf, bf, w1, b1, w2, b2 = params
    K = wf.shape[0]
    T = num_target
    n_front = BASE_FEAT + T
    T_pad = _round_up(T, LANE)
    nf_pad = _round_up(n_front, LANE)
    _, K_pad = _k_tiling(K)

    wf_p = jnp.zeros((K_pad, nf_pad), wf.dtype).at[:K, :n_front].set(wf)
    bf_p = jnp.zeros((1, nf_pad), bf.dtype).at[:, :n_front].set(bf)
    w1_p = jnp.zeros((nf_pad, T_pad), w1.dtype).at[:n_front, :T].set(w1)
    b1_p = jnp.zeros((1, T_pad), b1.dtype).at[:, :T].set(b1)
    w2_p = jnp.zeros((T_pad, T_pad), w2.dtype).at[:T, :T].set(w2)
    b2_p = jnp.zeros((1, T_pad), b2.dtype).at[:, :T].set(b2)
    return (wf_p, bf_p, w1_p, b1_p, w2_p, b2_p)


def _vmem_bytes(TB, TK, n_k, nf_pad, T_pad):
    wf_bufs = 1 if n_k == 1 else 2                # resident vs. K-streamed
    weights = (TK * nf_pad * 2 * wf_bufs          # wf (bf16)
               + nf_pad * T_pad * 2               # w1 (bf16, Buffered(1))
               + T_pad * T_pad * 2                # w2 (bf16, Buffered(1))
               + (nf_pad + 2 * T_pad) * 4)        # biases (f32, Buffered(1))
    tiles = 2 * TB * TK * 4 + 2 * TB * T_pad * 4  # x / out, double buffered
    scratch = TB * nf_pad * 4                     # front accumulator
    return weights + tiles + scratch


# -----------------------------------------------------------------------------
# Forward
# -----------------------------------------------------------------------------
@functools.partial(jax.jit, static_argnames=("num_target",))
def metachrom_forward(x, padded_params, num_target):
    wf, bf, w1, b1, w2, b2 = padded_params
    B, C, L = x.shape
    K = C * L
    T_pad = w2.shape[0]
    nf_pad = w1.shape[0]
    TK, K_pad = _k_tiling(K)
    n_k = K_pad // TK

    # x streamed as f32; bf16 cast happens inside the kernel.
    x_flat = x.reshape(B, K)
    if K_pad != K:
        x_flat = jnp.pad(x_flat, ((0, 0), (0, K_pad - K)))

    # --- batch tile selection ------------------------------------------------
    TB = min(512, _round_up(B, 16))
    # v7x megacore: make sure the "parallel" batch axis has >= 2 grid steps.
    if TB > 16 and _round_up(B, TB) // TB < 2:
        TB = max(16, _round_up((B + 1) // 2, 16))

    # --- generation-aware VMEM budget -----------------------------------------
    try:
        vmem_cap = int(pltpu.get_tpu_info().vmem_capacity_bytes)
    except Exception:                      # pragma: no cover - conservative fallback
        vmem_cap = 64 * 1024 * 1024        # v7x floor
    budget = int(0.85 * vmem_cap)
    while TB > 16 and int(1.25 * _vmem_bytes(TB, TK, n_k, nf_pad, T_pad)) > budget:
        TB = max(16, _round_up(TB // 2, 16))
    need = int(1.25 * _vmem_bytes(TB, TK, n_k, nf_pad, T_pad))
    vmem_limit = min(budget, max(32 * 1024 * 1024, need))

    B_pad = _round_up(B, TB)
    if B_pad != B:
        x_flat = jnp.pad(x_flat, ((0, B_pad - B), (0, 0)))

    grid = (B_pad // TB, n_k)

    def resident(shape):
        zeros = (0,) * len(shape)
        # Constant index_map -> stays in VMEM across all grid steps;
        # Buffered(1) -> single buffer (no wasted double-buffer copy).
        return pl.BlockSpec(shape, lambda i, k, _z=zeros: _z,
                            pipeline_mode=pl.Buffered(1))

    wf_spec = (resident(wf.shape) if n_k == 1
               else pl.BlockSpec((TK, nf_pad), lambda i, k: (k, 0)))

    cost = pl.CostEstimate(
        flops=2 * B_pad * (K_pad * nf_pad + nf_pad * T_pad + T_pad * T_pad),
        transcendentals=B_pad * T_pad,
        bytes_accessed=(B_pad * K_pad * 4
                        + sum(int(a.size) * a.dtype.itemsize
                              for a in padded_params)
                        + B_pad * T_pad * 4),
    )

    out = pl.pallas_call(
        metachrom_kernel,
        out_shape=jax.ShapeDtypeStruct((B_pad, T_pad), jnp.float32),
        grid=grid,
        in_specs=[
            pl.BlockSpec((TB, TK), lambda i, k: (i, k)),   # x tile, pipelined
            wf_spec,
            resident(bf.shape),
            resident(w1.shape), resident(b1.shape),
            resident(w2.shape), resident(b2.shape),
        ],
        out_specs=pl.BlockSpec((TB, T_pad), lambda i, k: (i, 0)),
        scratch_shapes=[pltpu.VMEM((TB, nf_pad), jnp.float32)],
        compiler_params=pltpu.CompilerParams(
            dimension_semantics=("parallel", "arbitrary"),
            vmem_limit_bytes=vmem_limit),
        cost_estimate=cost,
    )(x_flat, wf, bf, w1, b1, w2, b2)

    return out[:B, :num_target]


# -----------------------------------------------------------------------------
# Params + pure-JAX reference
# -----------------------------------------------------------------------------
def init_params(key, in_dim, num_target):
    ks = jax.random.split(key, 6)
    s = 0.05
    n_front = BASE_FEAT + num_target
    # Fused front-end projection (stand-in for [MetaFeat | ResMod]).
    wf = (s * jax.random.normal(ks[0], (in_dim, n_front), jnp.float32)
          ).astype(jnp.bfloat16)
    bf = s * jax.random.normal(ks[1], (1, n_front), jnp.float32)
    # classifier: Linear(919 + num_target, num_target) (stored transposed).
    w1 = (s * jax.random.normal(ks[2], (n_front, num_target), jnp.float32)
          ).astype(jnp.bfloat16)
    b1 = s * jax.random.normal(ks[3], (1, num_target), jnp.float32)
    # classifier: Linear(num_target, num_target).
    w2 = (s * jax.random.normal(ks[4], (num_target, num_target), jnp.float32)
          ).astype(jnp.bfloat16)
    b2 = s * jax.random.normal(ks[5], (1, num_target), jnp.float32)
    return (wf, bf, w1, b1, w2, b2)


def reference_forward(x, params):
    wf, bf, w1, b1, w2, b2 = params
    B, C, L = x.shape
    # Match the kernel's in-kernel bf16 cast of x and bf16 weights.
    xf = x.reshape(B, C * L).astype(jnp.bfloat16).astype(jnp.float32)
    hi = jax.lax.Precision.HIGHEST
    front = jnp.dot(xf, wf.astype(jnp.float32), precision=hi) + bf
    h = jnp.maximum(jnp.dot(front, w1.astype(jnp.float32), precision=hi) + b1,
                    0.0)
    return jax.nn.sigmoid(jnp.dot(h, w2.astype(jnp.float32), precision=hi) + b2)


if __name__ == "__main__":
    key = jax.random.PRNGKey(0)
    k_x, k_p = jax.random.split(key)

    B, C, L = 2, 4, 16          # small DNA-like input: [batch, 4 channels, length]
    num_target = 8

    x = jax.random.normal(k_x, (B, C, L), jnp.float32)
    params = init_params(k_p, C * L, num_target)
    padded = pad_params(params, num_target)

    out = jax.block_until_ready(metachrom_forward(x, padded,
                                                  num_target=num_target))
    ref = reference_forward(x, params)

    assert out.shape == (B, num_target)
    assert bool(jnp.all(jnp.isfinite(out)))
    # bf16 weights/activations with f32 accumulation vs. f32 HIGHEST reference.
    assert float(jnp.max(jnp.abs(out - ref))) < 2e-2

    print("KERNEL_OK")
</pallas_src>

<mosaic_0001>
module attributes {stable_mosaic.version = 11 : i64} {
  func.func @metachrom_kernel(%arg0: i32, %arg1: i32, %arg2: memref<16x64xf32, #tpu.memory_space<vmem>>, %arg3: memref<64x1024xbf16, #tpu.memory_space<vmem>>, %arg4: memref<1x1024xf32, #tpu.memory_space<vmem>>, %arg5: memref<1024x128xbf16, #tpu.memory_space<vmem>>, %arg6: memref<1x128xf32, #tpu.memory_space<vmem>>, %arg7: memref<128x128xbf16, #tpu.memory_space<vmem>>, %arg8: memref<1x128xf32, #tpu.memory_space<vmem>>, %arg9: memref<16x128xf32, #tpu.memory_space<vmem>>, %arg10: memref<16x1024xf32, #tpu.memory_space<vmem>>) attributes {dimension_semantics = [#tpu.dimension_semantics<parallel>, #tpu.dimension_semantics<arbitrary>], iteration_bounds = array<i64: 1, 1>, scalar_prefetch = 0 : i64, scratch_operands = 1 : i64, tpu.core_type = #tpu.core_type<tc>, window_params = [{transform_indices = @transform_0, window_bounds = array<i64: 16, 64>}, {pipeline_mode = #tpu.pipeline_mode<synchronous>, transform_indices = @transform_1, window_bounds = array<i64: 64, 1024>}, {pipeline_mode = #tpu.pipeline_mode<synchronous>, transform_indices = @transform_2, window_bounds = array<i64: 1, 1024>}, {pipeline_mode = #tpu.pipeline_mode<synchronous>, transform_indices = @transform_3, window_bounds = array<i64: 1024, 128>}, {pipeline_mode = #tpu.pipeline_mode<synchronous>, transform_indices = @transform_4, window_bounds = array<i64: 1, 128>}, {pipeline_mode = #tpu.pipeline_mode<synchronous>, transform_indices = @transform_5, window_bounds = array<i64: 128, 128>}, {pipeline_mode = #tpu.pipeline_mode<synchronous>, transform_indices = @transform_6, window_bounds = array<i64: 1, 128>}, {transform_indices = @transform_7, window_bounds = array<i64: 16, 128>}]} {
    %c0_i32 = arith.constant 0 : i32
    %0 = arith.cmpi eq, %arg1, %c0_i32 : i32
    %1 = arith.extui %0 : i1 to i32
    %c0_i32_0 = arith.constant 0 : i32
    %2 = arith.cmpi ne, %1, %c0_i32_0 : i32
    scf.if %2 {
      %cst_10 = arith.constant 0.000000e+00 : f32
      %13 = vector.broadcast %cst_10 : f32 to vector<16x1024xf32>
      %c0_11 = arith.constant 0 : index
      %c0_12 = arith.constant 0 : index
      %14 = vector.load %arg10[%c0_11, %c0_12] : memref<16x1024xf32, #tpu.memory_space<vmem>>, vector<16x1024xf32>
      tpu.vector_store %arg10[%c0_11, %c0_12], %13 {strides = array<i32>} : memref<16x1024xf32, #tpu.memory_space<vmem>>, vector<16x1024xf32>,
    } else {
    }
    %c0 = arith.constant 0 : index
    %c0_1 = arith.constant 0 : index
    %3 = vector.load %arg2[%c0, %c0_1] : memref<16x64xf32, #tpu.memory_space<vmem>>, vector<16x64xf32>
    %4 = arith.truncf %3 : vector<16x64xf32> to vector<16x64xbf16>
    %c0_2 = arith.constant 0 : index
    %c0_3 = arith.constant 0 : index
    %5 = vector.load %arg10[%c0_2, %c0_3] : memref<16x1024xf32, #tpu.memory_space<vmem>>, vector<16x1024xf32>
    %c0_4 = arith.constant 0 : index
    %c0_5 = arith.constant 0 : index
    %6 = vector.load %arg3[%c0_4, %c0_5] : memref<64x1024xbf16, #tpu.memory_space<vmem>>, vector<64x1024xbf16>
    %cst = arith.constant dense<0.000000e+00> : vector<16x1024xf32>
    %7 = tpu.matmul %4, %6, %cst {dimension_numbers = #tpu.dot_dimension_numbers<[1], [0], [0], [1], [0, 0, 1, 1], [], []>} : vector<16x64xbf16>, vector<64x1024xbf16>, vector<16x1024xf32> -> vector<16x1024xf32>
    %8 = arith.addf %5, %7 : vector<16x1024xf32>
    %c0_6 = arith.constant 0 : index
    %c0_7 = arith.constant 0 : index
    %9 = vector.load %arg10[%c0_6, %c0_7] : memref<16x1024xf32, #tpu.memory_space<vmem>>, vector<16x1024xf32>
    tpu.vector_store %arg10[%c0_6, %c0_7], %8 {strides = array<i32>} : memref<16x1024xf32, #tpu.memory_space<vmem>>, vector<16x1024xf32>,
    %c0_i32_8 = arith.constant 0 : i32
    %10 = arith.cmpi eq, %arg1, %c0_i32_8 : i32
    %11 = arith.extui %10 : i1 to i32
    %c0_i32_9 = arith.constant 0 : i32
    %12 = arith.cmpi ne, %11, %c0_i32_9 : i32
    scf.if %12 {
      %c0_10 = arith.constant 0 : index
      %c0_11 = arith.constant 0 : index
      %13 = vector.load %arg10[%c0_10, %c0_11] : memref<16x1024xf32, #tpu.memory_space<vmem>>, vector<16x1024xf32>
      %c0_12 = arith.constant 0 : index
      %c0_13 = arith.constant 0 : index
      %14 = vector.load %arg4[%c0_12, %c0_13] : memref<1x1024xf32, #tpu.memory_space<vmem>>, vector<1x1024xf32>
      %15 = vector.broadcast %14 : vector<1x1024xf32> to vector<16x1024xf32>
      %16 = arith.addf %13, %15 : vector<16x1024xf32>
      %17 = arith.truncf %16 : vector<16x1024xf32> to vector<16x1024xbf16>
      %c0_14 = arith.constant 0 : index
      %c0_15 = arith.constant 0 : index
      %18 = vector.load %arg5[%c0_14, %c0_15] : memref<1024x128xbf16, #tpu.memory_space<vmem>>, vector<1024x128xbf16>
      %cst_16 = arith.constant dense<0.000000e+00> : vector<16x128xf32>
      %19 = tpu.matmul %17, %18, %cst_16 {dimension_numbers = #tpu.dot_dimension_numbers<[1], [0], [0], [1], [0, 0, 1, 1], [], []>} : vector<16x1024xbf16>, vector<1024x128xbf16>, vector<16x128xf32> -> vector<16x128xf32>
      %c0_17 = arith.constant 0 : index
      %c0_18 = arith.constant 0 : index
      %20 = vector.load %arg6[%c0_17, %c0_18] : memref<1x128xf32, #tpu.memory_space<vmem>>, vector<1x128xf32>
      %21 = vector.broadcast %20 : vector<1x128xf32> to vector<16x128xf32>
      %22 = arith.addf %19, %21 : vector<16x128xf32>
      %cst_19 = arith.constant 0.000000e+00 : f32
      %23 = vector.broadcast %cst_19 : f32 to vector<16x128xf32>
      %24 = arith.maximumf %22, %23 : vector<16x128xf32>
      %25 = arith.truncf %24 : vector<16x128xf32> to vector<16x128xbf16>
      %c0_20 = arith.constant 0 : index
      %c0_21 = arith.constant 0 : index
      %26 = vector.load %arg7[%c0_20, %c0_21] : memref<128x128xbf16, #tpu.memory_space<vmem>>, vector<128x128xbf16>
      %cst_22 = arith.constant dense<0.000000e+00> : vector<16x128xf32>
      %27 = tpu.matmul %25, %26, %cst_22 {dimension_numbers = #tpu.dot_dimension_numbers<[1], [0], [0], [1], [0, 0, 1, 1], [], []>} : vector<16x128xbf16>, vector<128x128xbf16>, vector<16x128xf32> -> vector<16x128xf32>
      %c0_23 = arith.constant 0 : index
      %c0_24 = arith.constant 0 : index
      %28 = vector.load %arg8[%c0_23, %c0_24] : memref<1x128xf32, #tpu.memory_space<vmem>>, vector<1x128xf32>
      %29 = vector.broadcast %28 : vector<1x128xf32> to vector<16x128xf32>
      %30 = arith.addf %27, %29 : vector<16x128xf32>
      %cst_25 = arith.constant 5.000000e-01 : f32
      %31 = vector.broadcast %cst_25 : f32 to vector<16x128xf32>
      %32 = arith.mulf %31, %30 : vector<16x128xf32>
      %33 = math.tanh %32 : vector<16x128xf32>
      %cst_26 = arith.constant 1.000000e+00 : f32
      %34 = vector.broadcast %cst_26 : f32 to vector<16x128xf32>
      %35 = arith.addf %33, %34 : vector<16x128xf32>
      %cst_27 = arith.constant 5.000000e-01 : f32
      %36 = vector.broadcast %cst_27 : f32 to vector<16x128xf32>
      %37 = arith.mulf %36, %35 : vector<16x128xf32>
      %c0_28 = arith.constant 0 : index
      %c0_29 = arith.constant 0 : index
      %38 = vector.load %arg9[%c0_28, %c0_29] : memref<16x128xf32, #tpu.memory_space<vmem>>, vector<16x128xf32>
      tpu.vector_store %arg9[%c0_28, %c0_29], %37 {strides = array<i32>} : memref<16x128xf32, #tpu.memory_space<vmem>>, vector<16x128xf32>,
    } else {
    }
    return
  }
  func.func @transform_0(%arg0: i32, %arg1: i32) -> (i32, i32) {
    %c0_i32 = arith.constant 0 : i32
    return %arg0, %arg1 : i32, i32
  }
  func.func @transform_1(%arg0: i32, %arg1: i32) -> (i32, i32) {
    %c0_i32 = arith.constant 0 : i32
    %c0_i32_0 = arith.constant 0 : i32
    %c0_i32_1 = arith.constant 0 : i32
    return %c0_i32, %c0_i32_0 : i32, i32
  }
  func.func @transform_2(%arg0: i32, %arg1: i32) -> (i32, i32) {
    %c0_i32 = arith.constant 0 : i32
    %c0_i32_0 = arith.constant 0 : i32
    %c0_i32_1 = arith.constant 0 : i32
    return %c0_i32, %c0_i32_0 : i32, i32
  }
  func.func @transform_3(%arg0: i32, %arg1: i32) -> (i32, i32) {
    %c0_i32 = arith.constant 0 : i32
    %c0_i32_0 = arith.constant 0 : i32
    %c0_i32_1 = arith.constant 0 : i32
    return %c0_i32, %c0_i32_0 : i32, i32
  }
  func.func @transform_4(%arg0: i32, %arg1: i32) -> (i32, i32) {
    %c0_i32 = arith.constant 0 : i32
    %c0_i32_0 = arith.constant 0 : i32
    %c0_i32_1 = arith.constant 0 : i32
    return %c0_i32, %c0_i32_0 : i32, i32
  }
  func.func @transform_5(%arg0: i32, %arg1: i32) -> (i32, i32) {
    %c0_i32 = arith.constant 0 : i32
    %c0_i32_0 = arith.constant 0 : i32
    %c0_i32_1 = arith.constant 0 : i32
    return %c0_i32, %c0_i32_0 : i32, i32
  }
  func.func @transform_6(%arg0: i32, %arg1: i32) -> (i32, i32) {
    %c0_i32 = arith.constant 0 : i32
    %c0_i32_0 = arith.constant 0 : i32
    %c0_i32_1 = arith.constant 0 : i32
    return %c0_i32, %c0_i32_0 : i32, i32
  }
  func.func @transform_7(%arg0: i32, %arg1: i32) -> (i32, i32) {
    %c0_i32 = arith.constant 0 : i32
    %c0_i32_0 = arith.constant 0 : i32
    return %arg0, %c0_i32 : i32, i32
  }
}

</mosaic_0001>

<bundles_post_ra>
// kernel: metachrom_forward.1
= control target key start
LH: loop header
LB: loop body
LE: loop exit
PB: predicated region body
PF: predicated region fallthrough
CT: control target
= control target key end

     0   :  { %12 = vsyncpa [#allocation4], 0  ;;  %s1945_s0 = inlined_call_operand.vmem [shape: f32[16,64], index: 0, kind: input, shape index: {}]   ;;  %s1946_s1 = inlined_call_operand.hbm [shape: bf16[64,1024], index: 1, kind: input, shape index: {}]   ;;  %s1947_s2 = inlined_call_operand.vmem [shape: f32[1,1024], index: 2, kind: input, shape index: {}]   ;;  %s1948_s3 = inlined_call_operand.hbm [shape: bf16[1024,128], index: 3, kind: input, shape index: {}]   ;;  %s1949_s4 = inlined_call_operand.vmem [shape: f32[1,128], index: 4, kind: input, shape index: {}]   ;;  %s1950_s5 = inlined_call_operand.hbm [shape: bf16[128,128], index: 5, kind: input, shape index: {}]   ;;  %s1951_s6 = inlined_call_operand.vmem [shape: f32[1,128], index: 6, kind: input, shape index: {}]   ;;  %s1952_s7 = inlined_call_operand.vmem [shape: f32[16,128], index: 7, kind: output, shape index: {}]  }
   0x1   :  { %13 = vsyncpa [#allocation6], 0  ;;  %s1789_s24 = smov [#allocation5]   ;;  %s1719_s28 = scalar_lea.hbm %s1948_s3, 8192 }
   0x2   :  { %s35_s25 = sshll.u32 %s1789_s24, 4  ;;  %p1720_p0 = scmp.ne.s32.totalorder %s1948_s3, %s1719_s28  ;;  %s36_s25 = int_to_ptr.vmem [resolvable:$true] %s35_s25 }
   0x3   :  { %p1723_p1 = scmp.lt.u32.totalorder %s1719_s28, %s1948_s3 }
   0x5   :  { %p1725_p2 = pnand %p1723_p1, %p1720_p0 }
   0x7   :  { %1728 = shalt.err (!%p1725_p2)
}
   0x8   :  { %s1729_s10 = scalar_lea.vmem %s36_s25, 8192  ;;  %p1734_p4 = scmp.lt.s32.totalorder %s36_s25, %s36_s25 }
   0x9   :  { %p1730_p3 = scmp.ne.s32.totalorder %s36_s25, %s1729_s10  ;;  %p1735_p5 = scmp.lt.s32.totalorder %s1729_s10, %s1729_s10 }
   0xb   :  { %p1736_p6 = por %p1735_p5, %p1734_p4 }
   0xd   :  { %p1737_p7 = pnand %p1736_p6, %p1730_p3 }
   0xf   :  { %1740 = shalt.err (!%p1737_p7)
}
  0x10   :  { %s1790_s11 = smov 64   ;;  %s1791_s12 = smov 4  }
  0x11   :  { %41 = dma.hbm_to_vmem [thread:$0]  %s1948_s3, 8192, %s36_s25, [#allocation6], %s1790_s11, %s1790_s11, %s1791_s12  }
  0x12   :  { %s1792_s15 = smov [#allocation3]   ;;  %s1741_s19 = scalar_lea.hbm %s1946_s1, 4096 }
  0x13   :  { %s21_s16 = sshll.u32 %s1792_s15, 4  ;;  %p1742_p8 = scmp.ne.s32.totalorder %s1946_s1, %s1741_s19  ;;  %s22_s16 = int_to_ptr.vmem [resolvable:$true] %s21_s16 }
  0x14   :  { %p1745_p9 = scmp.lt.u32.totalorder %s1741_s19, %s1946_s1 }
  0x16   :  { %p1747_p10 = pnand %p1745_p9, %p1742_p8 }
  0x18   :  { %1750 = shalt.err (!%p1747_p10)
}
  0x19   :  { %s1751_s24 = scalar_lea.vmem %s22_s16, 4096  ;;  %p1756_p12 = scmp.lt.s32.totalorder %s22_s16, %s22_s16 }
  0x1a   :  { %p1752_p11 = scmp.ne.s32.totalorder %s22_s16, %s1751_s24  ;;  %p1757_p13 = scmp.lt.s32.totalorder %s1751_s24, %s1751_s24 }
  0x1c   :  { %p1758_p0 = por %p1757_p13, %p1756_p12 }
  0x1e   :  { %p1759_p1 = pnand %p1758_p0, %p1752_p11 }
  0x20   :  { %1762 = shalt.err (!%p1759_p1)
}
  0x21   :  { %s1793_s3 = smov 512   ;;  %s1794_s25 = smov 32  }
  0x22   :  { %27 = dma.hbm_to_vmem [thread:$0]  %s1946_s1, 4096, %s22_s16, [#allocation4], %s1793_s3, %s1793_s3, %s1794_s25  }
  0x23   :  { %s1795_s28 = smov [#allocation7]   ;;  %s1763_s9 = scalar_lea.hbm %s1950_s5, 1024 }
  0x24   :  { %s49_s29 = sshll.u32 %s1795_s28, 4  ;;  %p1764_p2 = scmp.ne.s32.totalorder %s1950_s5, %s1763_s9  ;;  %s50_s29 = int_to_ptr.vmem [resolvable:$true] %s49_s29 }
  0x25   :  { %p1767_p3 = scmp.lt.u32.totalorder %s1763_s9, %s1950_s5 }
  0x27   :  { %p1769_p4 = pnand %p1767_p3, %p1764_p2 }
  0x29   :  { %1772 = shalt.err (!%p1769_p4)
}
  0x2a   :  { %s1773_s17 = scalar_lea.vmem %s50_s29, 1024  ;;  %p1778_p6 = scmp.lt.s32.totalorder %s50_s29, %s50_s29 }
  0x2b   :  { %p1774_p5 = scmp.ne.s32.totalorder %s50_s29, %s1773_s17  ;;  %p1779_p7 = scmp.lt.s32.totalorder %s1773_s17, %s1773_s17 }
  0x2d   :  { %p1780_p8 = por %p1779_p7, %p1778_p6 }
  0x2f   :  { %p1781_p9 = pnand %p1780_p8, %p1774_p5 }
  0x31   :  { %1784 = shalt.err (!%p1781_p9)
}
  0x32   :  { %55 = dma.hbm_to_vmem [thread:$0]  %s1950_s5, 1024, %s50_s29, [#allocation6], %s1790_s11, %s1790_s11, %s1791_s12  }
  0x33   :  { %1785 = dma.done.wait [#allocation4], 4096  }
  0x34   :  { %1786 = vsyncadd [#allocation4], 4294963200 }
  0x35   :  { %1787 = dma.done.wait [#allocation6], 9216  }
  0x36   :  { %1788 = vsyncadd [#allocation6], 4294958080  ;;  %v1796_v0 = vmov 0   ;;  %v107_v1 = vld [vmem:[#allocation3] sm:$0xff]  ;;  %v109_v14 = vld [vmem:[#allocation3 + $0x10] sm:$0xff]  ;;  %vm299_vm0 = vcmask 523264  }
  0x37   :  { %335 = vmatprep.mubr.bf16.mxu1 %v1796_v0  ;;  %421 = vmatprep.mubr.bf16.mxu0 %v1796_v0  ;;  %v111_v2 = vld [vmem:[#allocation3 + $0x20] sm:$0xff]  ;;  %v113_v15 = vld [vmem:[#allocation3 + $0x30] sm:$0xff]  ;;  %v89_v26 = vld [vmem:[%s1945_s0 + $0x8] sm:$0xff]  ;;  %vm1798_vm1 = vmmov 0  }
  0x38   :  { %v115_v3 = vld [vmem:[#allocation3 + $0x40] sm:$0xff]  ;;  %v1407_v4 = vcombine.high %v107_v1, %v111_v2  ;;  %v1406_v5 = vcombine.low %v107_v1, %v111_v2  ;;  %v117_v16 = vld [vmem:[#allocation3 + $0x50] sm:$0xff]  ;;  %v1411_v17 = vcombine.high %v109_v14, %v113_v15  ;;  %v1410_v18 = vcombine.low %v109_v14, %v113_v15  ;;  %v108_v27 = vld [vmem:[#allocation3 + $0x8] sm:$0xff] }
  0x39   :  { %v119_v6 = vld [vmem:[#allocation3 + $0x60] sm:$0xff]  ;;  %v121_v19 = vld [vmem:[#allocation3 + $0x70] sm:$0xff]  ;;  %v112_v28 = vld [vmem:[#allocation3 + $0x28] sm:$0xff] }
  0x3a   :  { %v1415_v7 = vcombine.high %v115_v3, %v119_v6  ;;  %v123_v8 = vld [vmem:[#allocation3 + $0x80] sm:$0xff]  ;;  %303 = vmatprep.subr.bf16.mxu1 %v1407_v4  ;;  %v1414_v10 = vcombine.low %v115_v3, %v119_v6  ;;  %v1419_v21 = vcombine.high %v117_v16, %v121_v19  ;;  %v125_v22 = vld [vmem:[#allocation3 + $0x90] sm:$0xff]  ;;  %389 = vmatprep.subr.bf16.mxu0 %v1411_v17  ;;  %v116_v35 = vld [vmem:[#allocation3 + $0x48] sm:$0xff] }
  0x3b   :  { %v127_v9 = vld [vmem:[#allocation3 + $0xa0] sm:$0xff]  ;;  %304 = vmatpush1.bf16.msra.mxu1 %v1406_v5  ;;  %v129_v23 = vld [vmem:[#allocation3 + $0xb0] sm:$0xff]  ;;  %390 = vmatpush1.bf16.msra.mxu0 %v1410_v18  ;;  %v1418_v29 = vcombine.low %v117_v16, %v121_v19  ;;  %v1409_v34 = vcombine.high %v108_v27, %v112_v28  ;;  %v120_v36 = vld [vmem:[#allocation3 + $0x68] sm:$0xff]  ;;  %v1408_v40 = vcombine.low %v108_v27, %v112_v28 }
  0x3c   :  { %305 = vmatprep.subr.bf16.mxu1 %v1415_v7  ;;  %v1423_v11 = vcombine.high %v123_v8, %v127_v9  ;;  %v131_v12 = vld [vmem:[#allocation3 + $0xc0] sm:$0xff]  ;;  %v1422_v20 = vcombine.low %v123_v8, %v127_v9  ;;  %391 = vmatprep.subr.bf16.mxu0 %v1419_v21  ;;  %v1427_v30 = vcombine.high %v125_v22, %v129_v23  ;;  %v133_v31 = vld [vmem:[#allocation3 + $0xd0] sm:$0xff]  ;;  %v124_v42 = vld [vmem:[#allocation3 + $0x88] sm:$0xff] }
  0x3d   :  { %v135_v13 = vld [vmem:[#allocation3 + $0xe0] sm:$0xff]  ;;  %v137_v33 = vld [vmem:[#allocation3 + $0xf0] sm:$0xff]  ;;  %v1426_v37 = vcombine.low %v125_v22, %v129_v23  ;;  %v1417_v41 = vcombine.high %v116_v35, %v120_v36  ;;  %v128_v43 = vld [vmem:[#allocation3 + $0xa8] sm:$0xff]  ;;  %v1416_v46 = vcombine.low %v116_v35, %v120_v36 }
  0x3e   :  { %v1431_v24 = vcombine.high %v131_v12, %v135_v13  ;;  %v88_v25 = vld [vmem:[%s1945_s0] sm:$0xff]  ;;  %v1430_v32 = vcombine.low %v131_v12, %v135_v13  ;;  %v1435_v39 = vcombine.high %v133_v31, %v137_v33  ;;  %v1434_v44 = vcombine.low %v133_v31, %v137_v33  ;;  %v132_v47 = vld [vmem:[#allocation3 + $0xc8] sm:$0xff]  ;;  %v110_v53 = vld [vmem:[#allocation3 + $0x18] sm:$0xff] }
  0x3f   :  { %306 = vmatpush1.bf16.msra.mxu1 %v1414_v10  ;;  %392 = vmatpush1.bf16.msra.mxu0 %v1418_v29  ;;  %v1889_v38 = vpack.c.bf16 %v89_v26, %v88_v25  ;;  %v1643_v45 = vld [vmem:[#allocation5 + $0x40] sm:$0xff]   ;;  %v1425_v48 = vcombine.high %v124_v42, %v128_v43  ;;  %v136_v49 = vld [vmem:[#allocation3 + $0xe8] sm:$0xff]  ;;  %v1424_v52 = vcombine.low %v124_v42, %v128_v43  ;;  %v114_v55 = vld [vmem:[#allocation3 + $0x38] sm:$0xff] }
  0x40   :  { %307 = vmatprep.subr.bf16.mxu1 %v1423_v11  ;;  %393 = vmatprep.subr.bf16.mxu0 %v1427_v30  ;;  %v1644_v50 = vld [vmem:[#allocation5] sm:$0xff]   ;;  %v1645_v51 = vld [vmem:[#allocation5 + $0x48] sm:$0xff]   ;;  %v1433_v54 = vcombine.high %v132_v47, %v136_v49  ;;  %v1647_v57 = vld [vmem:[#allocation5 + $0x50] sm:$0xff]   ;;  %v1432_v58 = vcombine.low %v132_v47, %v136_v49  ;;  %v1413_v62 = vcombine.high %v110_v53, %v114_v55 }
  0x41   :  { %v1646_v56 = vld [vmem:[#allocation5 + $0x8] sm:$0xff]   ;;  %v118_v59 = vld [vmem:[#allocation3 + $0x58] sm:$0xff]  ;;  %v1648_v61 = vld [vmem:[#allocation5 + $0x10] sm:$0xff]   ;;  %v1412_v1 = vcombine.low %v110_v53, %v114_v55 }
  0x42   :  { %v122_v60 = vld [vmem:[#allocation3 + $0x78] sm:$0xff]  ;;  %v1651_v6 = vld [vmem:[#allocation5 + $0x60] sm:$0xff]   ;;  %v1655_v12 = vld [vmem:[#allocation5 + $0x68] sm:$0xff]  }
  0x43   :  { %308 = vmatpush1.bf16.msra.mxu1 %v1422_v20  ;;  %394 = vmatpush1.bf16.msra.mxu0 %v1426_v37  ;;  %v1649_v63 = vld [vmem:[#allocation5 + $0x58] sm:$0xff]   ;;  %v1421_v5 = vcombine.high %v118_v59, %v122_v60  ;;  %v1420_v7 = vcombine.low %v118_v59, %v122_v60  ;;  %v1653_v10 = vld [vmem:[#allocation5 + $0x20] sm:$0xff]   ;;  %v1657_v14 = vld [vmem:[#allocation5 + $0x28] sm:$0xff]  }
  0x44   :  { %309 = vmatprep.subr.bf16.mxu1 %v1431_v24  ;;  %395 = vmatprep.subr.bf16.mxu0 %v1435_v39  ;;  %v126_v2 = vld [vmem:[#allocation3 + $0x98] sm:$0xff]  ;;  %v1652_v16 = vld [vmem:[#allocation5 + $0xc0] sm:$0xff]   ;;  %v1658_v19 = vld [vmem:[#allocation5 + $0x88] sm:$0xff]  }
  0x45   :  { %v130_v3 = vld [vmem:[#allocation3 + $0xb8] sm:$0xff]  ;;  %v1654_v18 = vld [vmem:[#allocation5 + $0x80] sm:$0xff]   ;;  %v1659_v20 = vld [vmem:[#allocation5 + $0x70] sm:$0xff]  }
  0x46   :  { %v1650_v4 = vld [vmem:[#allocation5 + $0x18] sm:$0xff]   ;;  %v1429_v11 = vcombine.high %v126_v2, %v130_v3  ;;  %v1428_v13 = vcombine.low %v126_v2, %v130_v3  ;;  %v1660_v21 = vld [vmem:[#allocation5 + $0xd0] sm:$0xff]   ;;  %v1667_v28 = vld [vmem:[#allocation5 + $0xe0] sm:$0xff]  }
  0x47   :  { %310 = vmatpush1.bf16.msra.mxu1 %v1430_v32  ;;  %396 = vmatpush1.bf16.msra.mxu0 %v1434_v44  ;;  %v134_v8 = vld [vmem:[#allocation3 + $0xd8] sm:$0xff]  ;;  %v1661_v22 = vld [vmem:[#allocation5 + $0x30] sm:$0xff]   ;;  %v1668_v29 = vld [vmem:[#allocation5 + $0x140] sm:$0xff]  }
  0x48   :  { %346 = vmatprep.subr.bf16.mxu1 %v1409_v34  ;;  %1516 = vmatprep.subr.bf16.mxu0 %v1643_v45  ;;  %v138_v9 = vld [vmem:[#allocation3 + $0xf8] sm:$0xff]  ;;  %v1662_v23 = vld [vmem:[#allocation5 + $0x90] sm:$0xff]   ;;  %v1669_v30 = vld [vmem:[#allocation5 + $0xa0] sm:$0xff]  }
  0x49   :  { %v1437_v15 = vcombine.high %v134_v8, %v138_v9  ;;  %v1436_v17 = vcombine.low %v134_v8, %v138_v9  ;;  %v1663_v24 = vld [vmem:[#allocation5 + $0x78] sm:$0xff]   ;;  %v1671_v31 = vld [vmem:[#allocation5 + $0xe8] sm:$0xff]   ;;  %v1675_v33 = vld [vmem:[#allocation5 + $0xf0] sm:$0xff]  }
  0x4a   :  { %1438 = vmatmul.mubr.msk.bf16.vlgmr.msra.gmra.mrb[0].mxu1 %vm299_vm0, %v1889_v38  ;;  %1440 = vmatmul.mubr.msk.bf16.vlgmr.msra.gmra.mrb[0].mxu0 %vm299_vm0, %v1889_v38  ;;  %v1664_v25 = vld [vmem:[#allocation5 + $0xd8] sm:$0xff]   ;;  %v1673_v32 = vld [vmem:[#allocation5 + $0xa8] sm:$0xff]   ;;  %v1677_v34 = vld [vmem:[#allocation5 + $0xb0] sm:$0xff]  }
  0x4b   :  { %347 = vmatpush1.bf16.msra.mxu1 %v1408_v40  ;;  %378 = vmatprep.mubr.bf16.mxu1 %v1796_v0  ;;  %v1665_v26 = vld [vmem:[#allocation5 + $0x38] sm:$0xff]   ;;  %v1684_v37 = vld [vmem:[#allocation5 + $0x1c0] sm:$0xff]   ;;  %v1676_v8 = vld [vmem:[#allocation5 + $0x150] sm:$0xff]  }
  0x4c   :  { %348 = vmatprep.subr.bf16.mxu1 %v1417_v41  ;;  %1517 = vmatpush3.bf16.msra.mxu0 %v1644_v50  ;;  %v1666_v27 = vld [vmem:[#allocation5 + $0x98] sm:$0xff]   ;;  %v1907_v41 = vld [vmem:[%s1947_s2] sm:$0xff] }
  0x4d   :  { %1518 = vmatprep.subr.bf16.mxu0 %v1645_v51  ;;  %v1679_v35 = vld [vmem:[#allocation5 + $0xf8] sm:$0xff]   ;;  %v1670_v59 = vld [vmem:[#allocation5 + $0x100] sm:$0xff]  }
  0x4e   :  { %v1681_v36 = vld [vmem:[#allocation5 + $0xb8] sm:$0xff]  }
  0x4f   :  { %349 = vmatpush1.bf16.msra.mxu1 %v1416_v46 }
  0x50   :  { %350 = vmatprep.subr.bf16.mxu1 %v1425_v48  ;;  %1519 = vmatpush3.bf16.msra.mxu0 %v1646_v56 }
  0x51   :  { %1520 = vmatprep.subr.bf16.mxu0 %v1647_v57 }
  0x53   :  { %351 = vmatpush1.bf16.msra.mxu1 %v1424_v52 }
  0x54   :  { %352 = vmatprep.subr.bf16.mxu1 %v1433_v54  ;;  %1521 = vmatpush3.bf16.msra.mxu0 %v1648_v61  ;;  %v1672_v61 = vld [vmem:[#allocation5 + $0x148] sm:$0xff]  }
  0x55   :  { %1522 = vmatprep.subr.bf16.mxu0 %v1649_v63 }
  0x57   :  { %353 = vmatpush1.bf16.msra.mxu1 %v1432_v58 }
  0x58   :  { %432 = vmatprep.subr.bf16.mxu1 %v1413_v62  ;;  %1523 = vmatpush3.bf16.msra.mxu0 %v1650_v4 }
  0x59   :  { %1524 = vmatprep.subr.bf16.mxu0 %v1651_v6 }
  0x5a   :  { %1439 = vmatmul.mubr.msk.bf16.vlgmr.msra.gmra.mrb[4].mxu1 %vm299_vm0, %v1889_v38 }
  0x5b   :  { %433 = vmatpush1.bf16.msra.mxu1 %v1412_v1  ;;  %464 = vmatprep.mubr.bf16.mxu1 %v1796_v0  ;;  %v1656_v0 = vld [vmem:[#allocation5 + $0xc8] sm:$0xff]  }
  0x5c   :  { %434 = vmatprep.subr.bf16.mxu1 %v1421_v5  ;;  %1525 = vmatpush3.bf16.msra.mxu0 %v1653_v10  ;;  %v1674_v5 = vld [vmem:[#allocation5 + $0x108] sm:$0xff]  }
  0x5d   :  { %1526 = vmatprep.subr.bf16.mxu0 %v1655_v12  ;;  %v1678_v12 = vld [vmem:[#allocation5 + $0x110] sm:$0xff]  }
  0x5f   :  { %435 = vmatpush1.bf16.msra.mxu1 %v1420_v7 }
  0x60   :  { %436 = vmatprep.subr.bf16.mxu1 %v1429_v11  ;;  %1527 = vmatpush3.bf16.msra.mxu0 %v1657_v14  ;;  %v1680_v14 = vld [vmem:[#allocation5 + $0x158] sm:$0xff]  }
  0x61   :  { %1528 = vmatprep.subr.bf16.mxu0 %v1659_v20 }
  0x63   :  { %437 = vmatpush1.bf16.msra.mxu1 %v1428_v13 }
  0x64   :  { %438 = vmatprep.subr.bf16.mxu1 %v1437_v15  ;;  %1529 = vmatpush3.bf16.msra.mxu0 %v1661_v22  ;;  %v1683_v22 = vld [vmem:[#allocation5 + $0x160] sm:$0xff]  }
  0x65   :  { %1530 = vmatprep.subr.bf16.mxu0 %v1663_v24 }
  0x67   :  { %439 = vmatpush1.bf16.msra.mxu1 %v1436_v17 }
  0x68   :  { %1538 = vmatprep.subr.bf16.mxu1 %v1652_v16  ;;  %1531 = vmatpush3.bf16.msra.mxu0 %v1665_v26 }
  0x69   :  { %1560 = vmatprep.subr.bf16.mxu0 %v1668_v29  ;;  %v1687_v29 = vld [vmem:[#allocation5 + $0x168] sm:$0xff]  }
  0x6a   :  { %1441 = vmatmul.mubr.msk.bf16.vlgmr.msra.gmra.mrb[8].mxu1 %vm299_vm0, %v1889_v38  ;;  %v528_v38 = vlaneseq }
  0x6b   :  { %1539 = vmatpush3.bf16.msra.mxu1 %v1654_v18 }
  0x6c   :  { %1540 = vmatprep.subr.bf16.mxu1 %v1656_v0  ;;  %v1901_v39 = vshrl.u32 %v528_v38, 7  ;;  %v1682_v0 = vld [vmem:[#allocation5 + $0x118] sm:$0xff]   ;;  %v1693_v38 = vld [vmem:[#allocation5 + $0x130] sm:$0xff]  }
  0x6e   :  { %v530_v40 = vsub.s32 0, %v1901_v39  ;;  %v534_v42 = vsub.s32 1, %v1901_v39  ;;  %v546_v44 = vsub.s32 4, %v1901_v39  ;;  %v550_v47 = vsub.s32 5, %v1901_v39 }
  0x6f   :  { %1541 = vmatpush3.bf16.msra.mxu1 %v1658_v19  ;;  %v538_v7 = vsub.s32 2, %v1901_v39  ;;  %v542_v10 = vsub.s32 3, %v1901_v39 }
  0x70   :  { %1542 = vmatprep.subr.bf16.mxu1 %v1660_v21  ;;  %v531_v43 = vrot.slane %v1907_v41, %v530_v40  ;;  %v535_v46 = vrot.slane %v1907_v41, %v534_v42  ;;  %v547_v53 = vrot.slane %v1907_v41, %v546_v44  ;;  %v551_v56 = vrot.slane %v1907_v41, %v550_v47  ;;  %v1694_v40 = vld [vmem:[#allocation5 + $0x190] sm:$0xff]   ;;  %v1696_v44 = vld [vmem:[#allocation5 + $0x1d8] sm:$0xff]  }
  0x71   :  { %v539_v13 = vrot.slane %v1907_v41, %v538_v7  ;;  %v543_v16 = vrot.slane %v1907_v41, %v542_v10  ;;  %v1713_v7 = vld [vmem:[#allocation7 + $0x30] sm:$0xff]  }
  0x73   :  { %1543 = vmatpush3.bf16.msra.mxu1 %v1662_v23 }
  0x74   :  { %1544 = vmatprep.subr.bf16.mxu1 %v1664_v25 }
  0x77   :  { %1545 = vmatpush3.bf16.msra.mxu1 %v1666_v27  ;;  %v1685_v27 = vld [vmem:[#allocation5 + $0x120] sm:$0xff]  }
  0x78   :  { %1546 = vmatprep.subr.bf16.mxu1 %v1667_v28  ;;  %v1686_v28 = vld [vmem:[#allocation5 + $0x180] sm:$0xff]  }
  0x7b   :  { %1547 = vmatpush3.bf16.msra.mxu1 %v1669_v30  ;;  %v1688_v30 = vld [vmem:[#allocation5 + $0x1c8] sm:$0xff]  }
  0x7c   :  { %1548 = vmatprep.subr.bf16.mxu1 %v1671_v31  ;;  %v554_v31 = vsub.s32 6, %v1901_v39 }
  0x7f   :  { %1549 = vmatpush3.bf16.msra.mxu1 %v1673_v32  ;;  %v1689_v32 = vld [vmem:[#allocation5 + $0x128] sm:$0xff]  }
  0x80   :  { %1550 = vmatprep.subr.bf16.mxu1 %v1675_v33  ;;  %v1690_v33 = vld [vmem:[#allocation5 + $0x188] sm:$0xff]  }
  0x83   :  { %1551 = vmatpush3.bf16.msra.mxu1 %v1677_v34  ;;  %v558_v34 = vsub.s32 7, %v1901_v39  ;;  %v1697_v39 = vld [vmem:[#allocation5 + $0x138] sm:$0xff]  }
  0x84   :  { %1552 = vmatprep.subr.bf16.mxu1 %v1679_v35  ;;  %v1691_v35 = vld [vmem:[#allocation5 + $0x170] sm:$0xff]  }
  0x85   :  { %v559_v42 = vrot.slane %v1907_v41, %v558_v34 }
  0x87   :  { %1553 = vmatpush3.bf16.msra.mxu1 %v1681_v36  ;;  %v1692_v36 = vld [vmem:[#allocation5 + $0x1d0] sm:$0xff]  }
  0x88   :  { %1582 = vmatprep.subr.bf16.mxu1 %v1684_v37  ;;  %v555_v37 = vrot.slane %v1907_v41, %v554_v31 }
 0x11d   :  { %v337_v45 = vpop.f32.mrb[0].mxu1  ;;  %v423_v60 = vpop.f32.mrb[0].mxu0 }
 0x11e   :  { %v568_v48 = vadd.f32 %v531_v43, %v337_v45  ;;  %v339_v49 = vpop.f32.mrb[1].mxu1  ;;  %v1916_v62 = vadd.f32 %v547_v53, %v423_v60  ;;  %v425_v63 = vpop.f32.mrb[1].mxu0  ;;  %v1704_v60 = vld [vmem:[#allocation5 + $0x1b0] sm:$0xff]  }
 0x11f   :  { %v341_v50 = vpop.f32.mrb[2].mxu1  ;;  %v569_v54 = vadd.f32 %v535_v46, %v339_v49  ;;  %v573_v1 = vadd.f32 %v551_v56, %v425_v63  ;;  %v427_v2 = vpop.f32.mrb[2].mxu0  ;;  %v1706_v63 = vld [vmem:[#allocation5 + $0x1b8] sm:$0xff]  }
 0x120   :  { %v576_v51 = vadd.f32 %v531_v43, %v341_v50  ;;  %v343_v52 = vpop.f32.mrb[3].mxu1  ;;  %v1918_v3 = vadd.f32 %v547_v53, %v427_v2  ;;  %v429_v4 = vpop.f32.mrb[3].mxu0  ;;  %v1695_v43 = vld [vmem:[#allocation5 + $0x178] sm:$0xff]   ;;  %v1797_v2 = vmov 0.0  }
 0x121   :  { %v577_v55 = vadd.f32 %v535_v46, %v343_v52  ;;  %v581_v6 = vadd.f32 %v551_v56, %v429_v4  ;;  %v1710_v4 = vld [vmem:[#allocation7 + $0x18] sm:$0xff]  }
 0x122   :  { %v584_v57 = vpack.c.bf16 %v576_v51, %v568_v48  ;;  %v588_v9 = vpack.c.bf16 %v1918_v3, %v1916_v62  ;;  %v1698_v48 = vld [vmem:[#allocation5 + $0x198] sm:$0xff]   ;;  %v1699_v51 = vld [vmem:[#allocation5 + $0x1e0] sm:$0xff]   ;;  %v1708_v62 = vld [vmem:[#allocation7 + $0x8] sm:$0xff]  }
 0x123   :  { %v585_v58 = vpack.c.bf16 %v577_v55, %v569_v54  ;;  %v589_v11 = vpack.c.bf16 %v581_v6, %v573_v1  ;;  %v1700_v55 = vld [vmem:[#allocation5 + $0x1a0] sm:$0xff]   ;;  %v1709_v3 = vld [vmem:[#allocation7 + $0x10] sm:$0xff]   ;;  %v1712_v6 = vld [vmem:[#allocation7 + $0x28] sm:$0xff]  }
 0x124   :  { %v1707_v1 = vld [vmem:[#allocation7] sm:$0xff]  }
 0x125   :  { %1143 = vmatprep.mubr.bf16.mxu0 %v585_v58  ;;  %v1702_v58 = vld [vmem:[#allocation5 + $0x1a8] sm:$0xff]  }
 0x126   :  { %1144 = vmatmul.mubr.bf16.vlgmr.msra.gmra.mrb[4].mxu0 %v584_v57  ;;  %v1701_v57 = vld [vmem:[#allocation5 + $0x1e8] sm:$0xff]  }
 0x127   :  { %1561 = vmatpush3.bf16.msra.mxu0 %v1670_v59  ;;  %1225 = vmatprep.mubr.bf16.mxu0 %v589_v11  ;;  %v1703_v59 = vld [vmem:[#allocation5 + $0x1f0] sm:$0xff]  }
 0x128   :  { %1562 = vmatprep.subr.bf16.mxu0 %v1672_v61  ;;  %v1705_v61 = vld [vmem:[#allocation5 + $0x1f8] sm:$0xff]  }
 0x12b   :  { %1563 = vmatpush3.bf16.msra.mxu0 %v1674_v5  ;;  %v1711_v5 = vld [vmem:[#allocation7 + $0x20] sm:$0xff]  }
 0x12c   :  { %1564 = vmatprep.subr.bf16.mxu0 %v1676_v8  ;;  %v1714_v8 = vld [vmem:[#allocation7 + $0x38] sm:$0xff]  }
 0x12d   :  { %v380_v15 = vpop.f32.mrb[4].mxu1 }
 0x12e   :  { %v382_v17 = vpop.f32.mrb[5].mxu1  ;;  %v570_v19 = vadd.f32 %v539_v13, %v380_v15  ;;  %v1442_v15 = vld [vmem:[%s1949_s4] ss:$0 sm:$0xff] }
 0x12f   :  { %1565 = vmatpush3.bf16.msra.mxu0 %v1678_v12  ;;  %v384_v18 = vpop.f32.mrb[6].mxu1  ;;  %v571_v23 = vadd.f32 %v543_v16, %v382_v17 }
 0x130   :  { %v578_v20 = vadd.f32 %v539_v13, %v384_v18  ;;  %v386_v21 = vpop.f32.mrb[7].mxu1  ;;  %1566 = vmatprep.subr.bf16.mxu0 %v1680_v14 }
 0x131   :  { %v579_v24 = vadd.f32 %v543_v16, %v386_v21 }
 0x132   :  { %v586_v25 = vpack.c.bf16 %v578_v20, %v570_v19 }
 0x133   :  { %v587_v26 = vpack.c.bf16 %v579_v24, %v571_v23  ;;  %1567 = vmatpush3.bf16.msra.mxu0 %v1682_v0 }
 0x134   :  { %1568 = vmatprep.subr.bf16.mxu0 %v1683_v22 }
 0x135   :  { %1184 = vmatprep.mubr.bf16.mxu1 %v587_v26 }
 0x136   :  { %1185 = vmatmul.mubr.bf16.vlgmr.msra.gmra.mrb[12].mxu1 %v586_v25 }
 0x137   :  { %1569 = vmatpush3.bf16.msra.mxu0 %v1685_v27  ;;  %1583 = vmatpush3.bf16.msra.mxu1 %v1686_v28 }
 0x138   :  { %1570 = vmatprep.subr.bf16.mxu0 %v1687_v29  ;;  %1584 = vmatprep.subr.bf16.mxu1 %v1688_v30 }
 0x13b   :  { %1571 = vmatpush3.bf16.msra.mxu0 %v1689_v32  ;;  %1585 = vmatpush3.bf16.msra.mxu1 %v1690_v33 }
 0x13c   :  { %1572 = vmatprep.subr.bf16.mxu0 %v1691_v35  ;;  %1586 = vmatprep.subr.bf16.mxu1 %v1692_v36 }
 0x13d   :  { %v466_v45 = vpop.f32.mrb[8].mxu1 }
 0x13e   :  { %v574_v46 = vadd.f32 %v555_v37, %v466_v45  ;;  %v468_v47 = vpop.f32.mrb[9].mxu1 }
 0x13f   :  { %1573 = vmatpush3.bf16.msra.mxu0 %v1693_v38  ;;  %1587 = vmatpush3.bf16.msra.mxu1 %v1694_v40  ;;  %v575_v49 = vadd.f32 %v559_v42, %v468_v47  ;;  %v470_v50 = vpop.f32.mrb[10].mxu1 }
 0x140   :  { %1574 = vmatprep.subr.bf16.mxu0 %v1695_v43  ;;  %1588 = vmatprep.subr.bf16.mxu1 %v1696_v44  ;;  %v582_v52 = vadd.f32 %v555_v37, %v470_v50  ;;  %v472_v53 = vpop.f32.mrb[11].mxu1 }
 0x141   :  { %v583_v54 = vadd.f32 %v559_v42, %v472_v53 }
 0x142   :  { %v590_v41 = vpack.c.bf16 %v582_v52, %v574_v46  ;;  %v1507_v46 = vld [vmem:[%s1951_s6] ss:$0 sm:$0xff] }
 0x143   :  { %1575 = vmatpush3.bf16.msra.mxu0 %v1697_v39  ;;  %1589 = vmatpush3.bf16.msra.mxu1 %v1698_v48  ;;  %v591_v56 = vpack.c.bf16 %v583_v54, %v575_v49 }
 0x144   :  { %1590 = vmatprep.subr.bf16.mxu1 %v1699_v51  ;;  %1613 = vmatprep.subr.bf16.mxu0 %v1797_v2 }
 0x145   :  { %1266 = vmatprep.mubr.bf16.mxu1 %v591_v56 }
 0x146   :  { %1226 = vmatmul.mubr.bf16.vlgmr.msra.gmra.mrb[8].mxu0 %v588_v9 }
 0x147   :  { %1591 = vmatpush3.bf16.msra.mxu1 %v1700_v55  ;;  %1614 = vmatpush3.bf16.msra.mxu0 %v1707_v1 }
 0x148   :  { %1592 = vmatprep.subr.bf16.mxu1 %v1701_v57  ;;  %1615 = vmatprep.subr.bf16.mxu0 %v1797_v2 }
 0x149   :  { %1629 = vmatprep.mubr.msk.bf16.mxu0 %vm1798_vm1, %v1797_v2 }
 0x14b   :  { %1593 = vmatpush3.bf16.msra.mxu1 %v1702_v58  ;;  %1616 = vmatpush3.bf16.msra.mxu0 %v1708_v62 }
 0x14c   :  { %1594 = vmatprep.subr.bf16.mxu1 %v1703_v59  ;;  %1617 = vmatprep.subr.bf16.mxu0 %v1797_v2 }
 0x14f   :  { %1595 = vmatpush3.bf16.msra.mxu1 %v1704_v60  ;;  %1618 = vmatpush3.bf16.msra.mxu0 %v1709_v3 }
 0x150   :  { %1596 = vmatprep.subr.bf16.mxu1 %v1705_v61  ;;  %1619 = vmatprep.subr.bf16.mxu0 %v1797_v2 }
 0x153   :  { %1597 = vmatpush3.bf16.msra.mxu1 %v1706_v63  ;;  %1620 = vmatpush3.bf16.msra.mxu0 %v1710_v4 }
 0x154   :  { %1621 = vmatprep.subr.bf16.mxu0 %v1797_v2 }
 0x156   :  { %1267 = vmatmul.mubr.bf16.vlgmr.msra.gmra.mrb[16].mxu1 %v590_v41 }
 0x157   :  { %1622 = vmatpush3.bf16.msra.mxu0 %v1711_v5 }
 0x158   :  { %1623 = vmatprep.subr.bf16.mxu0 %v1797_v2 }
 0x15b   :  { %1624 = vmatpush3.bf16.msra.mxu0 %v1712_v6 }
 0x15c   :  { %1625 = vmatprep.subr.bf16.mxu0 %v1797_v2 }
 0x15f   :  { %1626 = vmatpush3.bf16.msra.mxu0 %v1713_v7 }
 0x160   :  { %1627 = vmatprep.subr.bf16.mxu0 %v1797_v2 }
 0x163   :  { %1628 = vmatpush3.bf16.msra.mxu0 %v1714_v8 }
 0x1f9   :  { %v1532_v9 = vpop.f32.mrb[4].mxu0 }
 0x1fa   :  { %v1533_v10 = vpop.f32.mrb[5].mxu0 }
 0x1fb   :  { %v1534_v11 = vadd.f32 %v1533_v10, %v1532_v9  ;;  %v1535_v12 = vpop.f32.mrb[6].mxu0 }
 0x1fc   :  { %v1536_v13 = vpop.f32.mrb[7].mxu0 }
 0x1fd   :  { %v1537_v14 = vadd.f32 %v1536_v13, %v1535_v12  ;;  %v1146_v18 = vadd.f32 %v1534_v11, %v1442_v15 }
 0x1ff   :  { %v1149_v21 = vadd.f32 %v1537_v14, %v1442_v15 }
 0x209   :  { %v1554_v16 = vpop.f32.mrb[12].mxu1 }
 0x20a   :  { %v1555_v17 = vpop.f32.mrb[13].mxu1 }
 0x20b   :  { %v1556_v0 = vadd.f32 %v1555_v17, %v1554_v16  ;;  %v1557_v19 = vpop.f32.mrb[14].mxu1 }
 0x20c   :  { %v1558_v20 = vpop.f32.mrb[15].mxu1 }
 0x20d   :  { %v1187_v22 = vadd.f32 %v1556_v0, %v1146_v18  ;;  %v1559_v23 = vadd.f32 %v1558_v20, %v1557_v19 }
 0x20f   :  { %v1190_v24 = vadd.f32 %v1559_v23, %v1149_v21 }
 0x219   :  { %v1576_v25 = vpop.f32.mrb[8].mxu0 }
 0x21a   :  { %v1577_v26 = vpop.f32.mrb[9].mxu0 }
 0x21b   :  { %v1578_v27 = vadd.f32 %v1577_v26, %v1576_v25  ;;  %v1579_v28 = vpop.f32.mrb[10].mxu0 }
 0x21c   :  { %v1580_v29 = vpop.f32.mrb[11].mxu0 }
 0x21d   :  { %v1228_v30 = vadd.f32 %v1578_v27, %v1187_v22  ;;  %v1581_v31 = vadd.f32 %v1580_v29, %v1579_v28 }
 0x21f   :  { %v1231_v32 = vadd.f32 %v1581_v31, %v1190_v24 }
 0x229   :  { %v1598_v33 = vpop.f32.mrb[16].mxu1 }
 0x22a   :  { %v1599_v34 = vpop.f32.mrb[17].mxu1 }
 0x22b   :  { %v1600_v35 = vadd.f32 %v1599_v34, %v1598_v33  ;;  %v1601_v36 = vpop.f32.mrb[18].mxu1 }
 0x22c   :  { %v1602_v37 = vpop.f32.mrb[19].mxu1 }
 0x22d   :  { %v1269_v38 = vadd.f32 %v1600_v35, %v1228_v30  ;;  %v1603_v40 = vadd.f32 %v1602_v37, %v1601_v36 }
 0x22f   :  { %v1272_v42 = vadd.f32 %v1603_v40, %v1231_v32  ;;  %v1275_v43 = vmax.f32 %v1269_v38, 0.0 }
 0x231   :  { %v1276_v44 = vmax.f32 %v1272_v42, 0.0 }
 0x233   :  { %v1277_v45 = vpack.c.bf16 %v1276_v44, %v1275_v43 }
 0x235   :  { %1630 = vmatmul.mubr.bf16.vlgmr.msra.gmra.mrb[12].mxu0 %v1277_v45 }
 0x308   :  { %v1383_v47 = vpop.f32.mrb[12].mxu0 }
 0x309   :  { %v1384_v39 = vadd.f32 %v1507_v46, %v1383_v47  ;;  %v1631_v48 = vpop.f32.mrb[13].mxu0 }
 0x30a   :  { %v1386_v49 = vpop.f32.mrb[14].mxu0 }
 0x30b   :  { %v1390_v50 = vmul.f32 0.5, %v1384_v39  ;;  %v1387_v51 = vadd.f32 %v1507_v46, %v1386_v49  ;;  %v1632_v52 = vpop.f32.mrb[15].mxu0 }
 0x30d   :  { %1715 = vtanh.f32 %v1390_v50  ;;  %v1391_v53 = vmul.f32 0.5, %v1387_v51 }
 0x30f   :  { %1717 = vtanh.f32 %v1391_v53 }
 0x317   :  { %v1716_v54 = vpop.eup %1715 }
 0x318   :  { %v1394_v41 = vadd.f32 1.0, %v1716_v54 }
 0x319   :  { %v1718_v55 = vpop.eup %1717 }
 0x31a   :  { %v1396_v56 = vmul.f32 0.5, %v1394_v41  ;;  %v1395_v57 = vadd.f32 1.0, %v1718_v55 }
 0x31c   :  { %1398 = vst [vmem:[%s1952_s7] sm:$0xff] %v1396_v56  ;;  %v1397_v58 = vmul.f32 0.5, %v1395_v57 }
 0x31e   :  { %1399 = vst [vmem:[%s1952_s7 + $0x8] sm:$0xff] %v1397_v58 }
 0x31f   :  { %1404 = vsyncpa [#allocation4], 1 }
 0x320   :  { %1405 = vsyncpa [#allocation6], 1 }

</bundles_post_ra>
